<compile_context>
chip_gen: v7x
topology: tpu7x:2x2x1
jax: 0.10.0
libtpu: 0.0.40
codegen_flags: <defaults>
</compile_context>

<pallas_src>
import functools

import jax
import jax.numpy as jnp
from jax import lax
from jax.experimental import pallas as pl
from jax.experimental.pallas import tpu as pltpu


# ----------------------------- Pallas kernel ------------------------------- #
def _downsample_conv_kernel(x_ref, w_ref, b_ref, o_ref, *, ho, wo):
    # x_ref: (1, 4*(ho+1), wo+1, C)  parity-split padded NHWC input for ONE image.
    #        Phase p = 2*row_parity + col_parity occupies rows [p*(ho+1), (p+1)*(ho+1)).
    # w_ref: (16, C, O)              per-tap weights, tap t = 4*kh + kw (resident).
    # b_ref: (O, 1)                  bias column (resident).
    # o_ref: (1, O, ho*wo)           channels-major output, lane-dense spatial axis.
    s = ho * wo
    c = x_ref.shape[-1]
    o = w_ref.shape[-1]

    acc = jnp.zeros((s, o), jnp.float32)
    for kh in range(4):
        ph, oh = kh % 2, kh // 2
        for kw in range(4):
            pw, ow = kw % 2, kw // 2
            r0 = (2 * ph + pw) * (ho + 1) + oh
            tap = x_ref[0, r0:r0 + ho, ow:ow + wo, :]        # (ho, wo, C) static slice
            tap = tap.reshape(s, c)                          # free when wo % 8 == 0
            acc = acc + jnp.dot(tap, w_ref[4 * kh + kw],
                                preferred_element_type=jnp.float32)

    out_t = jnp.transpose(acc) + b_ref[...]                  # (O, S) lane-dense store
    o_ref[0] = out_t.astype(o_ref.dtype)


# ------------------------------ Downsample --------------------------------- #
def downsample_conv(x, weight, bias):
    """Equivalent of Downsample(type='conv').forward.

    x:      (B, D, C, H, W)  float32
    weight: (O, C, 4, 4)     float32   (PyTorch Conv2d weight layout)
    bias:   (O,)             float32
    returns (B, D, O, H//2, W//2)
    """
    B, D, C, H, W = x.shape
    O = weight.shape[0]
    Ho, Wo = H // 2, W // 2
    S = Ho * Wo
    N = B * D

    # ---- light wrapper prep (fusable in XLA, ~1x traffic over x) ----
    x4 = x.reshape(N, C, H, W)
    x_nhwc = jnp.transpose(x4, (0, 2, 3, 1))                   # (N, H, W, C)
    x_pad = jnp.pad(x_nhwc, ((0, 0), (1, 1), (1, 1), (0, 0)))  # (N, H+2, W+2, C)

    # Parity split (space-to-depth by the stride): phase (ph, pw) holds padded
    # rows {ph, ph+2, ...} and cols {pw, pw+2, ...}; each is (N, Ho+1, Wo+1, C).
    phases = jnp.stack(
        [x_pad[:, ph:ph + 2 * Ho + 1:2, pw:pw + 2 * Wo + 1:2, :]
         for ph in range(2) for pw in range(2)],
        axis=1)                                                # (N, 4, Ho+1, Wo+1, C)
    phases = phases.reshape(N, 4 * (Ho + 1), Wo + 1, C)        # free reshape

    # per-tap weight matrices: w_taps[4*kh+kw, c, o] = weight[o, c, kh, kw]
    w_taps = jnp.transpose(weight, (2, 3, 1, 0)).reshape(16, C, O)
    b_col = bias.reshape(O, 1)

    # ---- VMEM budget (double-buffered in/out blocks + resident weights) ----
    blk_in = 4 * (Ho + 1) * (Wo + 1) * C * 4
    blk_out = O * S * 4
    est = 2 * blk_in + 2 * blk_out + 16 * C * O * 4 + blk_out + (1 << 20)
    vmem_limit = None
    if est > 24 * 1024 * 1024:
        vmem_limit = min(int(est * 3 // 2), 56 * 1024 * 1024)  # under v7x 64 MiB physical
    # TODO(synk): for very large H*W*C where a whole-image block no longer fits
    # VMEM, band over Ho with a manual double-buffered DMA instead.

    kernel = functools.partial(_downsample_conv_kernel, ho=Ho, wo=Wo)
    out_flat = pl.pallas_call(
        kernel,
        out_shape=jax.ShapeDtypeStruct((N, O, S), x.dtype),
        grid_spec=pltpu.PrefetchScalarGridSpec(
            num_scalar_prefetch=0,
            grid=(N,),
            in_specs=[
                pl.BlockSpec((1, 4 * (Ho + 1), Wo + 1, C),
                             lambda n: (n, 0, 0, 0)),
                pl.BlockSpec((16, C, O), lambda n: (0, 0, 0)),   # resident weights
                pl.BlockSpec((O, 1), lambda n: (0, 0)),          # resident bias
            ],
            out_specs=pl.BlockSpec((1, O, S), lambda n: (n, 0, 0)),
        ),
        compiler_params=pltpu.CompilerParams(
            dimension_semantics=("parallel",),   # shards across v7x's 2 TCs
            vmem_limit_bytes=vmem_limit,
        ),
    )(phases, w_taps, b_col)

    # (N, O, Ho*Wo) is already channels-major -> only free reshapes remain.
    return out_flat.reshape(B, D, O, Ho, Wo)


# ------------------------------ reference ---------------------------------- #
def downsample_conv_ref(x, weight, bias):
    B, D, C, H, W = x.shape
    O = weight.shape[0]
    x4 = x.reshape(B * D, C, H, W)
    out = lax.conv_general_dilated(
        x4, weight,
        window_strides=(2, 2),
        padding=((1, 1), (1, 1)),
        dimension_numbers=("NCHW", "OIHW", "NCHW"),
    )
    out = out + bias.reshape(1, O, 1, 1)
    return out.reshape(B, D, O, H // 2, W // 2)


# --------------------------------- main ------------------------------------ #
if __name__ == "__main__":
    key = jax.random.PRNGKey(0)
    k_x, k_w, k_b = jax.random.split(key, 3)

    B, D, C, H, W = 2, 3, 4, 16, 16
    out_chans = 8

    x = jax.random.normal(k_x, (B, D, C, H, W), dtype=jnp.float32)
    fan_in = C * 4 * 4
    weight = jax.random.normal(k_w, (out_chans, C, 4, 4), dtype=jnp.float32) / jnp.sqrt(fan_in)
    bias = jax.random.normal(k_b, (out_chans,), dtype=jnp.float32) * 0.01

    fn = jax.jit(downsample_conv)
    out = jax.block_until_ready(fn(x, weight, bias))

    ref = downsample_conv_ref(x, weight, bias)
    assert out.shape == (B, D, out_chans, H // 2, W // 2), out.shape
    assert jnp.allclose(out, ref, atol=1e-4, rtol=1e-4), "mismatch vs reference"

    print("KERNEL_OK")
</pallas_src>

<mosaic_0001>
module attributes {stable_mosaic.version = 11 : i64} {
  func.func @_downsample_conv_kernel(%arg0: i32, %arg1: memref<1x36x9x4xf32, #tpu.memory_space<vmem>>, %arg2: memref<16x4x8xf32, #tpu.memory_space<vmem>>, %arg3: memref<8x1xf32, #tpu.memory_space<vmem>>, %arg4: memref<1x8x64xf32, #tpu.memory_space<vmem>>) attributes {dimension_semantics = [#tpu.dimension_semantics<parallel>], iteration_bounds = array<i64: 6>, scalar_prefetch = 0 : i64, scratch_operands = 0 : i64, tpu.core_type = #tpu.core_type<tc>, window_params = [{transform_indices = @transform_0, window_bounds = array<i64: 1, 36, 9, 4>}, {pipeline_mode = #tpu.pipeline_mode<synchronous>, transform_indices = @transform_1, window_bounds = array<i64: 16, 4, 8>}, {pipeline_mode = #tpu.pipeline_mode<synchronous>, transform_indices = @transform_2, window_bounds = array<i64: 8, 1>}, {transform_indices = @transform_3, window_bounds = array<i64: 1, 8, 64>}]} {
    %cst = arith.constant 0.000000e+00 : f32
    %0 = vector.broadcast %cst : f32 to vector<64x8xf32>
    %c0 = arith.constant 0 : index
    %c0_0 = arith.constant 0 : index
    %c0_1 = arith.constant 0 : index
    %c0_2 = arith.constant 0 : index
    %1 = vector.load %arg1[%c0, %c0_0, %c0_1, %c0_2] : memref<1x36x9x4xf32, #tpu.memory_space<vmem>>, vector<1x8x8x4xf32>
    %2 = vector.shape_cast %1 : vector<1x8x8x4xf32> to vector<8x8x4xf32>
    %3 = vector.shape_cast %2 : vector<8x8x4xf32> to vector<64x4xf32>
    %c0_3 = arith.constant 0 : index
    %c0_4 = arith.constant 0 : index
    %c0_5 = arith.constant 0 : index
    %4 = vector.load %arg2[%c0_3, %c0_4, %c0_5] : memref<16x4x8xf32, #tpu.memory_space<vmem>>, vector<1x4x8xf32>
    %5 = vector.shape_cast %4 : vector<1x4x8xf32> to vector<4x8xf32>
    %cst_6 = arith.constant dense<0.000000e+00> : vector<64x8xf32>
    %6 = tpu.matmul %3, %5, %cst_6 {dimension_numbers = #tpu.dot_dimension_numbers<[1], [0], [0], [1], [0, 0, 1, 1], [], []>} : vector<64x4xf32>, vector<4x8xf32>, vector<64x8xf32> -> vector<64x8xf32>
    %7 = arith.addf %0, %6 : vector<64x8xf32>
    %c0_7 = arith.constant 0 : index
    %c9 = arith.constant 9 : index
    %c0_8 = arith.constant 0 : index
    %c0_9 = arith.constant 0 : index
    %8 = vector.load %arg1[%c0_7, %c9, %c0_8, %c0_9] : memref<1x36x9x4xf32, #tpu.memory_space<vmem>>, vector<1x8x8x4xf32>
    %9 = vector.shape_cast %8 : vector<1x8x8x4xf32> to vector<8x8x4xf32>
    %10 = vector.shape_cast %9 : vector<8x8x4xf32> to vector<64x4xf32>
    %c1 = arith.constant 1 : index
    %c0_10 = arith.constant 0 : index
    %c0_11 = arith.constant 0 : index
    %11 = vector.load %arg2[%c1, %c0_10, %c0_11] : memref<16x4x8xf32, #tpu.memory_space<vmem>>, vector<1x4x8xf32>
    %12 = vector.shape_cast %11 : vector<1x4x8xf32> to vector<4x8xf32>
    %cst_12 = arith.constant dense<0.000000e+00> : vector<64x8xf32>
    %13 = tpu.matmul %10, %12, %cst_12 {dimension_numbers = #tpu.dot_dimension_numbers<[1], [0], [0], [1], [0, 0, 1, 1], [], []>} : vector<64x4xf32>, vector<4x8xf32>, vector<64x8xf32> -> vector<64x8xf32>
    %14 = arith.addf %7, %13 : vector<64x8xf32>
    %c0_13 = arith.constant 0 : index
    %c0_14 = arith.constant 0 : index
    %c1_15 = arith.constant 1 : index
    %c0_16 = arith.constant 0 : index
    %15 = vector.load %arg1[%c0_13, %c0_14, %c1_15, %c0_16] : memref<1x36x9x4xf32, #tpu.memory_space<vmem>>, vector<1x8x8x4xf32>
    %16 = vector.shape_cast %15 : vector<1x8x8x4xf32> to vector<8x8x4xf32>
    %17 = vector.shape_cast %16 : vector<8x8x4xf32> to vector<64x4xf32>
    %c2 = arith.constant 2 : index
    %c0_17 = arith.constant 0 : index
    %c0_18 = arith.constant 0 : index
    %18 = vector.load %arg2[%c2, %c0_17, %c0_18] : memref<16x4x8xf32, #tpu.memory_space<vmem>>, vector<1x4x8xf32>
    %19 = vector.shape_cast %18 : vector<1x4x8xf32> to vector<4x8xf32>
    %cst_19 = arith.constant dense<0.000000e+00> : vector<64x8xf32>
    %20 = tpu.matmul %17, %19, %cst_19 {dimension_numbers = #tpu.dot_dimension_numbers<[1], [0], [0], [1], [0, 0, 1, 1], [], []>} : vector<64x4xf32>, vector<4x8xf32>, vector<64x8xf32> -> vector<64x8xf32>
    %21 = arith.addf %14, %20 : vector<64x8xf32>
    %c0_20 = arith.constant 0 : index
    %c9_21 = arith.constant 9 : index
    %c1_22 = arith.constant 1 : index
    %c0_23 = arith.constant 0 : index
    %22 = vector.load %arg1[%c0_20, %c9_21, %c1_22, %c0_23] : memref<1x36x9x4xf32, #tpu.memory_space<vmem>>, vector<1x8x8x4xf32>
    %23 = vector.shape_cast %22 : vector<1x8x8x4xf32> to vector<8x8x4xf32>
    %24 = vector.shape_cast %23 : vector<8x8x4xf32> to vector<64x4xf32>
    %c3 = arith.constant 3 : index
    %c0_24 = arith.constant 0 : index
    %c0_25 = arith.constant 0 : index
    %25 = vector.load %arg2[%c3, %c0_24, %c0_25] : memref<16x4x8xf32, #tpu.memory_space<vmem>>, vector<1x4x8xf32>
    %26 = vector.shape_cast %25 : vector<1x4x8xf32> to vector<4x8xf32>
    %cst_26 = arith.constant dense<0.000000e+00> : vector<64x8xf32>
    %27 = tpu.matmul %24, %26, %cst_26 {dimension_numbers = #tpu.dot_dimension_numbers<[1], [0], [0], [1], [0, 0, 1, 1], [], []>} : vector<64x4xf32>, vector<4x8xf32>, vector<64x8xf32> -> vector<64x8xf32>
    %28 = arith.addf %21, %27 : vector<64x8xf32>
    %c0_27 = arith.constant 0 : index
    %c18 = arith.constant 18 : index
    %c0_28 = arith.constant 0 : index
    %c0_29 = arith.constant 0 : index
    %29 = vector.load %arg1[%c0_27, %c18, %c0_28, %c0_29] : memref<1x36x9x4xf32, #tpu.memory_space<vmem>>, vector<1x8x8x4xf32>
    %30 = vector.shape_cast %29 : vector<1x8x8x4xf32> to vector<8x8x4xf32>
    %31 = vector.shape_cast %30 : vector<8x8x4xf32> to vector<64x4xf32>
    %c4 = arith.constant 4 : index
    %c0_30 = arith.constant 0 : index
    %c0_31 = arith.constant 0 : index
    %32 = vector.load %arg2[%c4, %c0_30, %c0_31] : memref<16x4x8xf32, #tpu.memory_space<vmem>>, vector<1x4x8xf32>
    %33 = vector.shape_cast %32 : vector<1x4x8xf32> to vector<4x8xf32>
    %cst_32 = arith.constant dense<0.000000e+00> : vector<64x8xf32>
    %34 = tpu.matmul %31, %33, %cst_32 {dimension_numbers = #tpu.dot_dimension_numbers<[1], [0], [0], [1], [0, 0, 1, 1], [], []>} : vector<64x4xf32>, vector<4x8xf32>, vector<64x8xf32> -> vector<64x8xf32>
    %35 = arith.addf %28, %34 : vector<64x8xf32>
    %c0_33 = arith.constant 0 : index
    %c27 = arith.constant 27 : index
    %c0_34 = arith.constant 0 : index
    %c0_35 = arith.constant 0 : index
    %36 = vector.load %arg1[%c0_33, %c27, %c0_34, %c0_35] : memref<1x36x9x4xf32, #tpu.memory_space<vmem>>, vector<1x8x8x4xf32>
    %37 = vector.shape_cast %36 : vector<1x8x8x4xf32> to vector<8x8x4xf32>
    %38 = vector.shape_cast %37 : vector<8x8x4xf32> to vector<64x4xf32>
    %c5 = arith.constant 5 : index
    %c0_36 = arith.constant 0 : index
    %c0_37 = arith.constant 0 : index
    %39 = vector.load %arg2[%c5, %c0_36, %c0_37] : memref<16x4x8xf32, #tpu.memory_space<vmem>>, vector<1x4x8xf32>
    %40 = vector.shape_cast %39 : vector<1x4x8xf32> to vector<4x8xf32>
    %cst_38 = arith.constant dense<0.000000e+00> : vector<64x8xf32>
    %41 = tpu.matmul %38, %40, %cst_38 {dimension_numbers = #tpu.dot_dimension_numbers<[1], [0], [0], [1], [0, 0, 1, 1], [], []>} : vector<64x4xf32>, vector<4x8xf32>, vector<64x8xf32> -> vector<64x8xf32>
    %42 = arith.addf %35, %41 : vector<64x8xf32>
    %c0_39 = arith.constant 0 : index
    %c18_40 = arith.constant 18 : index
    %c1_41 = arith.constant 1 : index
    %c0_42 = arith.constant 0 : index
    %43 = vector.load %arg1[%c0_39, %c18_40, %c1_41, %c0_42] : memref<1x36x9x4xf32, #tpu.memory_space<vmem>>, vector<1x8x8x4xf32>
    %44 = vector.shape_cast %43 : vector<1x8x8x4xf32> to vector<8x8x4xf32>
    %45 = vector.shape_cast %44 : vector<8x8x4xf32> to vector<64x4xf32>
    %c6 = arith.constant 6 : index
    %c0_43 = arith.constant 0 : index
    %c0_44 = arith.constant 0 : index
    %46 = vector.load %arg2[%c6, %c0_43, %c0_44] : memref<16x4x8xf32, #tpu.memory_space<vmem>>, vector<1x4x8xf32>
    %47 = vector.shape_cast %46 : vector<1x4x8xf32> to vector<4x8xf32>
    %cst_45 = arith.constant dense<0.000000e+00> : vector<64x8xf32>
    %48 = tpu.matmul %45, %47, %cst_45 {dimension_numbers = #tpu.dot_dimension_numbers<[1], [0], [0], [1], [0, 0, 1, 1], [], []>} : vector<64x4xf32>, vector<4x8xf32>, vector<64x8xf32> -> vector<64x8xf32>
    %49 = arith.addf %42, %48 : vector<64x8xf32>
    %c0_46 = arith.constant 0 : index
    %c27_47 = arith.constant 27 : index
    %c1_48 = arith.constant 1 : index
    %c0_49 = arith.constant 0 : index
    %50 = vector.load %arg1[%c0_46, %c27_47, %c1_48, %c0_49] : memref<1x36x9x4xf32, #tpu.memory_space<vmem>>, vector<1x8x8x4xf32>
    %51 = vector.shape_cast %50 : vector<1x8x8x4xf32> to vector<8x8x4xf32>
    %52 = vector.shape_cast %51 : vector<8x8x4xf32> to vector<64x4xf32>
    %c7 = arith.constant 7 : index
    %c0_50 = arith.constant 0 : index
    %c0_51 = arith.constant 0 : index
    %53 = vector.load %arg2[%c7, %c0_50, %c0_51] : memref<16x4x8xf32, #tpu.memory_space<vmem>>, vector<1x4x8xf32>
    %54 = vector.shape_cast %53 : vector<1x4x8xf32> to vector<4x8xf32>
    %cst_52 = arith.constant dense<0.000000e+00> : vector<64x8xf32>
    %55 = tpu.matmul %52, %54, %cst_52 {dimension_numbers = #tpu.dot_dimension_numbers<[1], [0], [0], [1], [0, 0, 1, 1], [], []>} : vector<64x4xf32>, vector<4x8xf32>, vector<64x8xf32> -> vector<64x8xf32>
    %56 = arith.addf %49, %55 : vector<64x8xf32>
    %c0_53 = arith.constant 0 : index
    %c1_54 = arith.constant 1 : index
    %c0_55 = arith.constant 0 : index
    %c0_56 = arith.constant 0 : index
    %57 = vector.load %arg1[%c0_53, %c1_54, %c0_55, %c0_56] : memref<1x36x9x4xf32, #tpu.memory_space<vmem>>, vector<1x8x8x4xf32>
    %58 = vector.shape_cast %57 : vector<1x8x8x4xf32> to vector<8x8x4xf32>
    %59 = vector.shape_cast %58 : vector<8x8x4xf32> to vector<64x4xf32>
    %c8 = arith.constant 8 : index
    %c0_57 = arith.constant 0 : index
    %c0_58 = arith.constant 0 : index
    %60 = vector.load %arg2[%c8, %c0_57, %c0_58] : memref<16x4x8xf32, #tpu.memory_space<vmem>>, vector<1x4x8xf32>
    %61 = vector.shape_cast %60 : vector<1x4x8xf32> to vector<4x8xf32>
    %cst_59 = arith.constant dense<0.000000e+00> : vector<64x8xf32>
    %62 = tpu.matmul %59, %61, %cst_59 {dimension_numbers = #tpu.dot_dimension_numbers<[1], [0], [0], [1], [0, 0, 1, 1], [], []>} : vector<64x4xf32>, vector<4x8xf32>, vector<64x8xf32> -> vector<64x8xf32>
    %63 = arith.addf %56, %62 : vector<64x8xf32>
    %c0_60 = arith.constant 0 : index
    %c10 = arith.constant 10 : index
    %c0_61 = arith.constant 0 : index
    %c0_62 = arith.constant 0 : index
    %64 = vector.load %arg1[%c0_60, %c10, %c0_61, %c0_62] : memref<1x36x9x4xf32, #tpu.memory_space<vmem>>, vector<1x8x8x4xf32>
    %65 = vector.shape_cast %64 : vector<1x8x8x4xf32> to vector<8x8x4xf32>
    %66 = vector.shape_cast %65 : vector<8x8x4xf32> to vector<64x4xf32>
    %c9_63 = arith.constant 9 : index
    %c0_64 = arith.constant 0 : index
    %c0_65 = arith.constant 0 : index
    %67 = vector.load %arg2[%c9_63, %c0_64, %c0_65] : memref<16x4x8xf32, #tpu.memory_space<vmem>>, vector<1x4x8xf32>
    %68 = vector.shape_cast %67 : vector<1x4x8xf32> to vector<4x8xf32>
    %cst_66 = arith.constant dense<0.000000e+00> : vector<64x8xf32>
    %69 = tpu.matmul %66, %68, %cst_66 {dimension_numbers = #tpu.dot_dimension_numbers<[1], [0], [0], [1], [0, 0, 1, 1], [], []>} : vector<64x4xf32>, vector<4x8xf32>, vector<64x8xf32> -> vector<64x8xf32>
    %70 = arith.addf %63, %69 : vector<64x8xf32>
    %c0_67 = arith.constant 0 : index
    %c1_68 = arith.constant 1 : index
    %c1_69 = arith.constant 1 : index
    %c0_70 = arith.constant 0 : index
    %71 = vector.load %arg1[%c0_67, %c1_68, %c1_69, %c0_70] : memref<1x36x9x4xf32, #tpu.memory_space<vmem>>, vector<1x8x8x4xf32>
    %72 = vector.shape_cast %71 : vector<1x8x8x4xf32> to vector<8x8x4xf32>
    %73 = vector.shape_cast %72 : vector<8x8x4xf32> to vector<64x4xf32>
    %c10_71 = arith.constant 10 : index
    %c0_72 = arith.constant 0 : index
    %c0_73 = arith.constant 0 : index
    %74 = vector.load %arg2[%c10_71, %c0_72, %c0_73] : memref<16x4x8xf32, #tpu.memory_space<vmem>>, vector<1x4x8xf32>
    %75 = vector.shape_cast %74 : vector<1x4x8xf32> to vector<4x8xf32>
    %cst_74 = arith.constant dense<0.000000e+00> : vector<64x8xf32>
    %76 = tpu.matmul %73, %75, %cst_74 {dimension_numbers = #tpu.dot_dimension_numbers<[1], [0], [0], [1], [0, 0, 1, 1], [], []>} : vector<64x4xf32>, vector<4x8xf32>, vector<64x8xf32> -> vector<64x8xf32>
    %77 = arith.addf %70, %76 : vector<64x8xf32>
    %c0_75 = arith.constant 0 : index
    %c10_76 = arith.constant 10 : index
    %c1_77 = arith.constant 1 : index
    %c0_78 = arith.constant 0 : index
    %78 = vector.load %arg1[%c0_75, %c10_76, %c1_77, %c0_78] : memref<1x36x9x4xf32, #tpu.memory_space<vmem>>, vector<1x8x8x4xf32>
    %79 = vector.shape_cast %78 : vector<1x8x8x4xf32> to vector<8x8x4xf32>
    %80 = vector.shape_cast %79 : vector<8x8x4xf32> to vector<64x4xf32>
    %c11 = arith.constant 11 : index
    %c0_79 = arith.constant 0 : index
    %c0_80 = arith.constant 0 : index
    %81 = vector.load %arg2[%c11, %c0_79, %c0_80] : memref<16x4x8xf32, #tpu.memory_space<vmem>>, vector<1x4x8xf32>
    %82 = vector.shape_cast %81 : vector<1x4x8xf32> to vector<4x8xf32>
    %cst_81 = arith.constant dense<0.000000e+00> : vector<64x8xf32>
    %83 = tpu.matmul %80, %82, %cst_81 {dimension_numbers = #tpu.dot_dimension_numbers<[1], [0], [0], [1], [0, 0, 1, 1], [], []>} : vector<64x4xf32>, vector<4x8xf32>, vector<64x8xf32> -> vector<64x8xf32>
    %84 = arith.addf %77, %83 : vector<64x8xf32>
    %c0_82 = arith.constant 0 : index
    %c19 = arith.constant 19 : index
    %c0_83 = arith.constant 0 : index
    %c0_84 = arith.constant 0 : index
    %85 = vector.load %arg1[%c0_82, %c19, %c0_83, %c0_84] : memref<1x36x9x4xf32, #tpu.memory_space<vmem>>, vector<1x8x8x4xf32>
    %86 = vector.shape_cast %85 : vector<1x8x8x4xf32> to vector<8x8x4xf32>
    %87 = vector.shape_cast %86 : vector<8x8x4xf32> to vector<64x4xf32>
    %c12 = arith.constant 12 : index
    %c0_85 = arith.constant 0 : index
    %c0_86 = arith.constant 0 : index
    %88 = vector.load %arg2[%c12, %c0_85, %c0_86] : memref<16x4x8xf32, #tpu.memory_space<vmem>>, vector<1x4x8xf32>
    %89 = vector.shape_cast %88 : vector<1x4x8xf32> to vector<4x8xf32>
    %cst_87 = arith.constant dense<0.000000e+00> : vector<64x8xf32>
    %90 = tpu.matmul %87, %89, %cst_87 {dimension_numbers = #tpu.dot_dimension_numbers<[1], [0], [0], [1], [0, 0, 1, 1], [], []>} : vector<64x4xf32>, vector<4x8xf32>, vector<64x8xf32> -> vector<64x8xf32>
    %91 = arith.addf %84, %90 : vector<64x8xf32>
    %c0_88 = arith.constant 0 : index
    %c28 = arith.constant 28 : index
    %c0_89 = arith.constant 0 : index
    %c0_90 = arith.constant 0 : index
    %92 = vector.load %arg1[%c0_88, %c28, %c0_89, %c0_90] : memref<1x36x9x4xf32, #tpu.memory_space<vmem>>, vector<1x8x8x4xf32>
    %93 = vector.shape_cast %92 : vector<1x8x8x4xf32> to vector<8x8x4xf32>
    %94 = vector.shape_cast %93 : vector<8x8x4xf32> to vector<64x4xf32>
    %c13 = arith.constant 13 : index
    %c0_91 = arith.constant 0 : index
    %c0_92 = arith.constant 0 : index
    %95 = vector.load %arg2[%c13, %c0_91, %c0_92] : memref<16x4x8xf32, #tpu.memory_space<vmem>>, vector<1x4x8xf32>
    %96 = vector.shape_cast %95 : vector<1x4x8xf32> to vector<4x8xf32>
    %cst_93 = arith.constant dense<0.000000e+00> : vector<64x8xf32>
    %97 = tpu.matmul %94, %96, %cst_93 {dimension_numbers = #tpu.dot_dimension_numbers<[1], [0], [0], [1], [0, 0, 1, 1], [], []>} : vector<64x4xf32>, vector<4x8xf32>, vector<64x8xf32> -> vector<64x8xf32>
    %98 = arith.addf %91, %97 : vector<64x8xf32>
    %c0_94 = arith.constant 0 : index
    %c19_95 = arith.constant 19 : index
    %c1_96 = arith.constant 1 : index
    %c0_97 = arith.constant 0 : index
    %99 = vector.load %arg1[%c0_94, %c19_95, %c1_96, %c0_97] : memref<1x36x9x4xf32, #tpu.memory_space<vmem>>, vector<1x8x8x4xf32>
    %100 = vector.shape_cast %99 : vector<1x8x8x4xf32> to vector<8x8x4xf32>
    %101 = vector.shape_cast %100 : vector<8x8x4xf32> to vector<64x4xf32>
    %c14 = arith.constant 14 : index
    %c0_98 = arith.constant 0 : index
    %c0_99 = arith.constant 0 : index
    %102 = vector.load %arg2[%c14, %c0_98, %c0_99] : memref<16x4x8xf32, #tpu.memory_space<vmem>>, vector<1x4x8xf32>
    %103 = vector.shape_cast %102 : vector<1x4x8xf32> to vector<4x8xf32>
    %cst_100 = arith.constant dense<0.000000e+00> : vector<64x8xf32>
    %104 = tpu.matmul %101, %103, %cst_100 {dimension_numbers = #tpu.dot_dimension_numbers<[1], [0], [0], [1], [0, 0, 1, 1], [], []>} : vector<64x4xf32>, vector<4x8xf32>, vector<64x8xf32> -> vector<64x8xf32>
    %105 = arith.addf %98, %104 : vector<64x8xf32>
    %c0_101 = arith.constant 0 : index
    %c28_102 = arith.constant 28 : index
    %c1_103 = arith.constant 1 : index
    %c0_104 = arith.constant 0 : index
    %106 = vector.load %arg1[%c0_101, %c28_102, %c1_103, %c0_104] : memref<1x36x9x4xf32, #tpu.memory_space<vmem>>, vector<1x8x8x4xf32>
    %107 = vector.shape_cast %106 : vector<1x8x8x4xf32> to vector<8x8x4xf32>
    %108 = vector.shape_cast %107 : vector<8x8x4xf32> to vector<64x4xf32>
    %c15 = arith.constant 15 : index
    %c0_105 = arith.constant 0 : index
    %c0_106 = arith.constant 0 : index
    %109 = vector.load %arg2[%c15, %c0_105, %c0_106] : memref<16x4x8xf32, #tpu.memory_space<vmem>>, vector<1x4x8xf32>
    %110 = vector.shape_cast %109 : vector<1x4x8xf32> to vector<4x8xf32>
    %cst_107 = arith.constant dense<0.000000e+00> : vector<64x8xf32>
    %111 = tpu.matmul %108, %110, %cst_107 {dimension_numbers = #tpu.dot_dimension_numbers<[1], [0], [0], [1], [0, 0, 1, 1], [], []>} : vector<64x4xf32>, vector<4x8xf32>, vector<64x8xf32> -> vector<64x8xf32>
    %112 = arith.addf %105, %111 : vector<64x8xf32>
    %113 = tpu.transpose %112, [1, 0] : vector<64x8xf32> -> vector<8x64xf32>
    %c0_108 = arith.constant 0 : index
    %c0_109 = arith.constant 0 : index
    %114 = vector.load %arg3[%c0_108, %c0_109] : memref<8x1xf32, #tpu.memory_space<vmem>>, vector<8x1xf32>
    %115 = vector.broadcast %114 : vector<8x1xf32> to vector<8x64xf32>
    %116 = arith.addf %113, %115 : vector<8x64xf32>
    %c0_110 = arith.constant 0 : index
    %c0_111 = arith.constant 0 : index
    %c0_112 = arith.constant 0 : index
    %117 = vector.load %arg4[%c0_110, %c0_111, %c0_112] : memref<1x8x64xf32, #tpu.memory_space<vmem>>, vector<1x8x64xf32>
    %118 = vector.shape_cast %117 : vector<1x8x64xf32> to vector<8x64xf32>
    %119 = vector.shape_cast %116 : vector<8x64xf32> to vector<1x8x64xf32>
    tpu.vector_store %arg4[%c0_110, %c0_111, %c0_112], %119 {strides = array<i32>} : memref<1x8x64xf32, #tpu.memory_space<vmem>>, vector<1x8x64xf32>,
    return
  }
  func.func @transform_0(%arg0: i32) -> (i32, i32, i32, i32) {
    %c0_i32 = arith.constant 0 : i32
    %c0_i32_0 = arith.constant 0 : i32
    %c0_i32_1 = arith.constant 0 : i32
    %c0_i32_2 = arith.constant 0 : i32
    return %arg0, %c0_i32, %c0_i32_0, %c0_i32_1 : i32, i32, i32, i32
  }
  func.func @transform_1(%arg0: i32) -> (i32, i32, i32) {
    %c0_i32 = arith.constant 0 : i32
    %c0_i32_0 = arith.constant 0 : i32
    %c0_i32_1 = arith.constant 0 : i32
    %c0_i32_2 = arith.constant 0 : i32
    return %c0_i32, %c0_i32_0, %c0_i32_1 : i32, i32, i32
  }
  func.func @transform_2(%arg0: i32) -> (i32, i32) {
    %c0_i32 = arith.constant 0 : i32
    %c0_i32_0 = arith.constant 0 : i32
    %c0_i32_1 = arith.constant 0 : i32
    return %c0_i32, %c0_i32_0 : i32, i32
  }
  func.func @transform_3(%arg0: i32) -> (i32, i32, i32) {
    %c0_i32 = arith.constant 0 : i32
    %c0_i32_0 = arith.constant 0 : i32
    %c0_i32_1 = arith.constant 0 : i32
    return %arg0, %c0_i32, %c0_i32_0 : i32, i32, i32
  }
}

</mosaic_0001>

<bundles_post_ra>
// kernel: downsample_conv.1
= control target key start
LH: loop header
LB: loop body
LE: loop exit
PB: predicated region body
PF: predicated region fallthrough
CT: control target
= control target key end

     0   :  { %s3464_s12 = smov 0   ;;  %s3770_s0 = inlined_call_operand.vmem [shape: f32[6,36,9,4], index: 0, kind: input, shape index: {}]   ;;  %s3771_s1 = inlined_call_operand.vmem [shape: f32[16,4,8], index: 1, kind: input, shape index: {}]   ;;  %s3772_s2 = inlined_call_operand.vmem [shape: f32[8,1], index: 2, kind: input, shape index: {}]   ;;  %s3773_s3 = inlined_call_operand.vmem [shape: f32[6,8,64], index: 3, kind: output, shape index: {}]  }
   0x1 LB: > { %s2655_s13 = sadd.s32 4294967295, %s3441_s12   ;;  %p2659_p0 = scmp.ge.s32.totalorder %s3441_s12, 1  ;;  %s3441_s12 = sphi %s3464_s12, %s13_s12  }
   0x2   : > { %p137_p1 = scmp.lt.s32.totalorder %s3441_s12, 7 }
   0x4   : > { %p138_p2 = pnand %p2659_p0, %p137_p1 }
   0x5   : > { %v2670_v0 = vld [vmem:[%s3771_s1 + $0x4] sm:$0xf] (!%p138_p2)  ;;  %vm214_vm0 = vcmask (!%p138_p2), 1043456   ;;  %v2797_v1 = vld [vmem:[%s3771_s1 + $0x20] sm:$0xf] (!%p138_p2)  ;;  %p160_p3 = scmp.lt.s32.totalorder (!%p138_p2), %s2655_s13, 5 }
   0x6   : > { %141 = sbr.rel (%p138_p2) target bundleno = 479 (0x1df), region = 32  ;;  %3079 = vmatprep.subr.msk.mxu1 (!%p138_p2), %vm214_vm0, %v2670_v0  ;;  %3191 = vmatprep.subr.msk.mxu0 (!%p138_p2), %vm214_vm0, %v2797_v1  ;;  %v177_v2 = vld [vmem:[%s3771_s1] sm:$0xf] (!%p138_p2)  ;;  %v2815_v3 = vld [vmem:[%s3771_s1 + $0x24] sm:$0xf] (!%p138_p2)  ;;  %vm189_vm1 = vcmask (!%p138_p2), 31744  }
   0x7   : > { %3080 = vmatpush3.msk.msra.mxu1 (!%p138_p2), %vm214_vm0, %v2670_v0  ;;  %3192 = vmatpush3.msk.msra.mxu0 (!%p138_p2), %vm214_vm0, %v2797_v1  ;;  %v3443_v7 = vmov (!%p138_p2), 0   ;;  %v2689_v11 = vld [vmem:[%s3771_s1 + $0x8] sm:$0xf] (!%p138_p2)  ;;  %v2593_v17 = vld [vmem:[%s3772_s2] sm:$0xff] (!%p138_p2)  ;;  %v2707_v25 = vld [vmem:[%s3771_s1 + $0xc] sm:$0xf] (!%p138_p2) }
   0x8   : > { %3093 = vmatprep.subr.msk.mxu1 (!%p138_p2), %vm214_vm0, %v177_v2  ;;  %3205 = vmatprep.subr.msk.mxu0 (!%p138_p2), %vm214_vm0, %v2815_v3  ;;  %v2833_v12 = vld [vmem:[%s3771_s1 + $0x28] sm:$0xf] (!%p138_p2)  ;;  %v2851_v26 = vld [vmem:[%s3771_s1 + $0x2c] sm:$0xf] (!%p138_p2)  ;;  %v2725_v32 = vld [vmem:[%s3771_s1 + $0x10] sm:$0xf] (!%p138_p2) }
   0x9   : > { %3434 = vset.pattern.permute.xlu0 (!%p138_p2), %v3443_v7  ;;  %v2869_v33 = vld [vmem:[%s3771_s1 + $0x30] sm:$0xf] (!%p138_p2)  ;;  %v2743_v43 = vld [vmem:[%s3771_s1 + $0x14] sm:$0xf] (!%p138_p2)  ;;  %v2761_v54 = vld [vmem:[%s3771_s1 + $0x18] sm:$0xf] (!%p138_p2) }
   0xa   : > { %2596 = vperm.xlu0 (!%p138_p2), %3434, %v2593_v17   ;;  %v2887_v44 = vld [vmem:[%s3771_s1 + $0x34] sm:$0xf] (!%p138_p2)  ;;  %v2905_v55 = vld [vmem:[%s3771_s1 + $0x38] sm:$0xf] (!%p138_p2)  ;;  %v2779_v1 = vld [vmem:[%s3771_s1 + $0x1c] sm:$0xf] (!%p138_p2) }
   0xb   : > { %vm2600_vm2 = vcmask (!%p138_p2), 523264  }
   0xd   : > { %s3775_s13 = smov (!%p160_p3, %s2655_s13), 5 }
   0xe   : > { %s3423_s22 = smul.u32 576, %s3775_s13 }
  0x10   : > { %s3496_s25 = scalar_lea.vmem %s3770_s0, %s3423_s22 }
  0x11   : > { %v2662_v4 = vld [vmem:[%s3496_s25 + $0x90] sm:$0xff]  ;;  %v2663_v6 = vld [vmem:[%s3496_s25 + $0xa0] sm:$0xff] }
  0x12   : > { %v2789_v5 = vld [vmem:[%s3496_s25 + $0x10] sm:$0xff]  ;;  %3081 = vmatprep.mubr.msk.f32.mxu1 %vm189_vm1, %v2662_v4  ;;  %v2790_v8 = vld [vmem:[%s3496_s25 + $0x20] sm:$0xff] }
  0x13   : > { %3193 = vmatprep.mubr.msk.f32.mxu0 %vm189_vm1, %v2789_v5  ;;  %v2664_v9 = vld [vmem:[%s3496_s25 + $0xb0] sm:$0xff]  ;;  %3082 = vmatmul.mubr.msk.f32.vlgmr.msra.gmra.mrb[0].mxu1 %vm189_vm1, %v2663_v6  ;;  %v2665_v13 = vld [vmem:[%s3496_s25 + $0xc0] sm:$0xff] }
  0x14   : > { %v2791_v10 = vld [vmem:[%s3496_s25 + $0x30] sm:$0xff]  ;;  %3194 = vmatmul.mubr.msk.f32.vlgmr.msra.gmra.mrb[0].mxu0 %vm189_vm1, %v2790_v8  ;;  %3094 = vmatpush3.msk.msra.mxu1 %vm214_vm0, %v177_v2  ;;  %v2792_v14 = vld [vmem:[%s3496_s25 + $0x40] sm:$0xff]  ;;  %v2923_v2 = vld [vmem:[%s3771_s1 + $0x3c] sm:$0xf] }
  0x15   : > { %3206 = vmatpush3.msk.msra.mxu0 %vm214_vm0, %v2815_v3  ;;  %3084 = vmatprep.mubr.msk.f32.mxu1 %vm189_vm1, %v2664_v9  ;;  %v2666_v15 = vld [vmem:[%s3496_s25 + $0xd0] sm:$0xff]  ;;  %v2667_v18 = vld [vmem:[%s3496_s25 + $0xe0] sm:$0xff] }
  0x16   : > { %3196 = vmatprep.mubr.msk.f32.mxu0 %vm189_vm1, %v2791_v10  ;;  %v2793_v16 = vld [vmem:[%s3496_s25 + $0x50] sm:$0xff]  ;;  %3107 = vmatprep.subr.msk.mxu1 %vm214_vm0, %v2689_v11  ;;  %v2794_v19 = vld [vmem:[%s3496_s25 + $0x60] sm:$0xff] }
  0x17   : > { %3219 = vmatprep.subr.msk.mxu0 %vm214_vm0, %v2833_v12  ;;  %3085 = vmatmul.mubr.msk.f32.gmra.mrb[2].mxu1 %vm189_vm1, %v2665_v13  ;;  %v2668_v20 = vld [vmem:[%s3496_s25 + $0xf0] sm:$0xff]  ;;  %v2669_v22 = vld [vmem:[%s3496_s25 + $0x100] sm:$0xff] }
  0x18   : > { %3197 = vmatmul.mubr.msk.f32.gmra.mrb[2].mxu0 %vm189_vm1, %v2792_v14  ;;  %3087 = vmatprep.mubr.msk.f32.mxu1 %vm189_vm1, %v2666_v15  ;;  %v2795_v21 = vld [vmem:[%s3496_s25 + $0x70] sm:$0xff]  ;;  %v2796_v23 = vld [vmem:[%s3496_s25 + $0x80] sm:$0xff] }
  0x19   : > { %3199 = vmatprep.mubr.msk.f32.mxu0 %vm189_vm1, %v2793_v16  ;;  %v169_v24 = vld [vmem:[%s3496_s25] sm:$0xff]  ;;  %v2814_v27 = vld [vmem:[%s3496_s25 + $0x110] sm:$0xff] }
  0x1a   : > { %v455_v28 = vld [vmem:[%s3496_s25 + $0x1] sm:$0xff]  ;;  %v2825_v29 = vld [vmem:[%s3496_s25 + $0x11] sm:$0xff] }
  0x1b   : > { %3088 = vmatmul.mubr.msk.f32.gmra.mrb[4].mxu1 %vm189_vm1, %v2667_v18  ;;  %v2826_v30 = vld [vmem:[%s3496_s25 + $0x21] sm:$0xff]  ;;  %v2827_v31 = vld [vmem:[%s3496_s25 + $0x31] sm:$0xff] }
  0x1c   : > { %3200 = vmatmul.mubr.msk.f32.gmra.mrb[4].mxu0 %vm189_vm1, %v2794_v19  ;;  %3090 = vmatprep.mubr.msk.f32.mxu1 %vm189_vm1, %v2668_v20  ;;  %v2828_v34 = vld [vmem:[%s3496_s25 + $0x41] sm:$0xff]  ;;  %v2829_v35 = vld [vmem:[%s3496_s25 + $0x51] sm:$0xff] }
  0x1d   : > { %3202 = vmatprep.mubr.msk.f32.mxu0 %vm189_vm1, %v2795_v21  ;;  %v2830_v36 = vld [vmem:[%s3496_s25 + $0x61] sm:$0xff]  ;;  %v2831_v37 = vld [vmem:[%s3496_s25 + $0x71] sm:$0xff] }
  0x1e   : > { %v2832_v38 = vld [vmem:[%s3496_s25 + $0x81] sm:$0xff]  ;;  %v2699_v39 = vld [vmem:[%s3496_s25 + $0x91] sm:$0xff] }
  0x1f   : > { %3091 = vmatmul.mubr.msk.f32.gmra.mrb[6].mxu1 %vm189_vm1, %v2669_v22  ;;  %v2843_v40 = vld [vmem:[%s3496_s25 + $0xa1] sm:$0xff]  ;;  %v2844_v41 = vld [vmem:[%s3496_s25 + $0xb1] sm:$0xff] }
  0x20   : > { %3203 = vmatmul.mubr.msk.f32.gmra.mrb[6].mxu0 %vm189_vm1, %v2796_v23  ;;  %3095 = vmatprep.mubr.msk.f32.mxu1 %vm189_vm1, %v169_v24  ;;  %v2845_v42 = vld [vmem:[%s3496_s25 + $0xc1] sm:$0xff]  ;;  %v2846_v45 = vld [vmem:[%s3496_s25 + $0xd1] sm:$0xff] }
  0x21   : > { %3207 = vmatprep.mubr.msk.f32.mxu0 %vm189_vm1, %v2663_v6  ;;  %v2847_v46 = vld [vmem:[%s3496_s25 + $0xe1] sm:$0xff]  ;;  %v2848_v47 = vld [vmem:[%s3496_s25 + $0xf1] sm:$0xff] }
  0x22   : > { %v2849_v48 = vld [vmem:[%s3496_s25 + $0x101] sm:$0xff]  ;;  %v2850_v49 = vld [vmem:[%s3496_s25 + $0x111] sm:$0xff] }
  0x23   : > { %3096 = vmatmul.mubr.msk.f32.vlgmr.msra.gmra.mrb[0].mxu1 %vm189_vm1, %v2789_v5  ;;  %v2717_v50 = vld [vmem:[%s3496_s25 + $0x120] sm:$0xff]  ;;  %v2861_v51 = vld [vmem:[%s3496_s25 + $0x130] sm:$0xff] }
  0x24   : > { %3208 = vmatmul.mubr.msk.f32.vlgmr.msra.gmra.mrb[0].mxu0 %vm189_vm1, %v2664_v9  ;;  %3108 = vmatpush3.msk.msra.mxu1 %vm214_vm0, %v2689_v11  ;;  %v2862_v52 = vld [vmem:[%s3496_s25 + $0x140] sm:$0xff]  ;;  %v2863_v53 = vld [vmem:[%s3496_s25 + $0x150] sm:$0xff] }
  0x25   : > { %3220 = vmatpush3.msk.msra.mxu0 %vm214_vm0, %v2833_v12  ;;  %3098 = vmatprep.mubr.msk.f32.mxu1 %vm189_vm1, %v2790_v8  ;;  %v2864_v56 = vld [vmem:[%s3496_s25 + $0x160] sm:$0xff]  ;;  %v2865_v57 = vld [vmem:[%s3496_s25 + $0x170] sm:$0xff] }
  0x26   : > { %3210 = vmatprep.mubr.msk.f32.mxu0 %vm189_vm1, %v2665_v13  ;;  %3121 = vmatprep.subr.msk.mxu1 %vm214_vm0, %v2707_v25  ;;  %v2866_v58 = vld [vmem:[%s3496_s25 + $0x180] sm:$0xff]  ;;  %v2867_v59 = vld [vmem:[%s3496_s25 + $0x190] sm:$0xff] }
  0x27   : > { %3233 = vmatprep.subr.msk.mxu0 %vm214_vm0, %v2851_v26  ;;  %3099 = vmatmul.mubr.msk.f32.gmra.mrb[2].mxu1 %vm189_vm1, %v2791_v10  ;;  %v2868_v60 = vld [vmem:[%s3496_s25 + $0x1a0] sm:$0xff]  ;;  %v2735_v61 = vld [vmem:[%s3496_s25 + $0x1b0] sm:$0xff] }
  0x28   : > { %3211 = vmatmul.mubr.msk.f32.gmra.mrb[2].mxu0 %vm189_vm1, %v2666_v15  ;;  %3101 = vmatprep.mubr.msk.f32.mxu1 %vm189_vm1, %v2792_v14  ;;  %v2879_v62 = vld [vmem:[%s3496_s25 + $0x1c0] sm:$0xff]  ;;  %v2880_v63 = vld [vmem:[%s3496_s25 + $0x1d0] sm:$0xff] }
  0x29   : > { %3213 = vmatprep.mubr.msk.f32.mxu0 %vm189_vm1, %v2667_v18  ;;  %v2881_v0 = vld [vmem:[%s3496_s25 + $0x1e0] sm:$0xff]  ;;  %v2882_v3 = vld [vmem:[%s3496_s25 + $0x1f0] sm:$0xff] }
  0x2a   : > { %v2883_v4 = vld [vmem:[%s3496_s25 + $0x200] sm:$0xff]  ;;  %v2884_v5 = vld [vmem:[%s3496_s25 + $0x210] sm:$0xff] }
  0x2b   : > { %3102 = vmatmul.mubr.msk.f32.gmra.mrb[4].mxu1 %vm189_vm1, %v2793_v16  ;;  %v2885_v6 = vld [vmem:[%s3496_s25 + $0x220] sm:$0xff]  ;;  %v2886_v7 = vld [vmem:[%s3496_s25 + $0x230] sm:$0xff] }
  0x2c   : > { %3214 = vmatmul.mubr.msk.f32.gmra.mrb[4].mxu0 %vm189_vm1, %v2668_v20  ;;  %3104 = vmatprep.mubr.msk.f32.mxu1 %vm189_vm1, %v2794_v19  ;;  %v2753_v8 = vld [vmem:[%s3496_s25 + $0x121] sm:$0xff]  ;;  %v2897_v9 = vld [vmem:[%s3496_s25 + $0x131] sm:$0xff] }
  0x2d   : > { %3216 = vmatprep.mubr.msk.f32.mxu0 %vm189_vm1, %v2669_v22  ;;  %v2898_v10 = vld [vmem:[%s3496_s25 + $0x141] sm:$0xff]  ;;  %v2899_v11 = vld [vmem:[%s3496_s25 + $0x151] sm:$0xff] }
  0x2e   : > { %v2900_v12 = vld [vmem:[%s3496_s25 + $0x161] sm:$0xff]  ;;  %v2901_v13 = vld [vmem:[%s3496_s25 + $0x171] sm:$0xff] }
  0x2f   : > { %3105 = vmatmul.mubr.msk.f32.gmra.mrb[6].mxu1 %vm189_vm1, %v2795_v21  ;;  %v2902_v14 = vld [vmem:[%s3496_s25 + $0x181] sm:$0xff]  ;;  %v2903_v15 = vld [vmem:[%s3496_s25 + $0x191] sm:$0xff] }
  0x30   : > { %3217 = vmatmul.mubr.msk.f32.gmra.mrb[6].mxu0 %vm189_vm1, %v2814_v27  ;;  %3109 = vmatprep.mubr.msk.f32.mxu1 %vm189_vm1, %v455_v28  ;;  %v2904_v16 = vld [vmem:[%s3496_s25 + $0x1a1] sm:$0xff]  ;;  %v2771_v17 = vld [vmem:[%s3496_s25 + $0x1b1] sm:$0xff] }
  0x31   : > { %3221 = vmatprep.mubr.msk.f32.mxu0 %vm189_vm1, %v2825_v29  ;;  %v2915_v18 = vld [vmem:[%s3496_s25 + $0x1c1] sm:$0xff]  ;;  %v2916_v19 = vld [vmem:[%s3496_s25 + $0x1d1] sm:$0xff] }
  0x32   : > { %v2917_v20 = vld [vmem:[%s3496_s25 + $0x1e1] sm:$0xff]  ;;  %v2918_v21 = vld [vmem:[%s3496_s25 + $0x1f1] sm:$0xff] }
  0x33   : > { %3110 = vmatmul.mubr.msk.f32.vlgmr.msra.gmra.mrb[0].mxu1 %vm189_vm1, %v2825_v29  ;;  %v2919_v22 = vld [vmem:[%s3496_s25 + $0x201] sm:$0xff]  ;;  %v2920_v23 = vld [vmem:[%s3496_s25 + $0x211] sm:$0xff] }
  0x34   : > { %3222 = vmatmul.mubr.msk.f32.vlgmr.msra.gmra.mrb[0].mxu0 %vm189_vm1, %v2826_v30  ;;  %3122 = vmatpush3.msk.msra.mxu1 %vm214_vm0, %v2707_v25  ;;  %v2921_v24 = vld [vmem:[%s3496_s25 + $0x221] sm:$0xff]  ;;  %v2922_v25 = vld [vmem:[%s3496_s25 + $0x231] sm:$0xff]  ;;  %s2661_s25 = sshll.u32 %s3775_s13, 3 }
  0x35   : > { %3234 = vmatpush3.msk.msra.mxu0 %vm214_vm0, %v2851_v26  ;;  %3112 = vmatprep.mubr.msk.f32.mxu1 %vm189_vm1, %v2826_v30  ;;  %s168_s30 = scalar_lea.vmem %s3773_s3, %s2661_s25 }
  0x36   : > { %3224 = vmatprep.mubr.msk.f32.mxu0 %vm189_vm1, %v2827_v31  ;;  %3135 = vmatprep.subr.msk.mxu1 %vm214_vm0, %v2725_v32 }
  0x37   : > { %3247 = vmatprep.subr.msk.mxu0 %vm214_vm0, %v2869_v33  ;;  %3113 = vmatmul.mubr.msk.f32.gmra.mrb[2].mxu1 %vm189_vm1, %v2827_v31 }
  0x38   : > { %3225 = vmatmul.mubr.msk.f32.gmra.mrb[2].mxu0 %vm189_vm1, %v2828_v34  ;;  %3115 = vmatprep.mubr.msk.f32.mxu1 %vm189_vm1, %v2828_v34 }
  0x39   : > { %3227 = vmatprep.mubr.msk.f32.mxu0 %vm189_vm1, %v2829_v35 }
  0x3b   : > { %3116 = vmatmul.mubr.msk.f32.gmra.mrb[4].mxu1 %vm189_vm1, %v2829_v35 }
  0x3c   : > { %3228 = vmatmul.mubr.msk.f32.gmra.mrb[4].mxu0 %vm189_vm1, %v2830_v36  ;;  %3118 = vmatprep.mubr.msk.f32.mxu1 %vm189_vm1, %v2830_v36 }
  0x3d   : > { %3230 = vmatprep.mubr.msk.f32.mxu0 %vm189_vm1, %v2831_v37 }
  0x3f   : > { %3119 = vmatmul.mubr.msk.f32.gmra.mrb[6].mxu1 %vm189_vm1, %v2831_v37 }
  0x40   : > { %3231 = vmatmul.mubr.msk.f32.gmra.mrb[6].mxu0 %vm189_vm1, %v2832_v38  ;;  %3123 = vmatprep.mubr.msk.f32.mxu1 %vm189_vm1, %v2699_v39 }
  0x41   : > { %3235 = vmatprep.mubr.msk.f32.mxu0 %vm189_vm1, %v2843_v40 }
  0x43   : > { %3124 = vmatmul.mubr.msk.f32.vlgmr.msra.gmra.mrb[0].mxu1 %vm189_vm1, %v2843_v40 }
  0x44   : > { %3236 = vmatmul.mubr.msk.f32.vlgmr.msra.gmra.mrb[0].mxu0 %vm189_vm1, %v2844_v41  ;;  %3136 = vmatpush3.msk.msra.mxu1 %vm214_vm0, %v2725_v32 }
  0x45   : > { %3248 = vmatpush3.msk.msra.mxu0 %vm214_vm0, %v2869_v33  ;;  %3126 = vmatprep.mubr.msk.f32.mxu1 %vm189_vm1, %v2844_v41 }
  0x46   : > { %3238 = vmatprep.mubr.msk.f32.mxu0 %vm189_vm1, %v2845_v42  ;;  %3149 = vmatprep.subr.msk.mxu1 %vm214_vm0, %v2743_v43 }
  0x47   : > { %3261 = vmatprep.subr.msk.mxu0 %vm214_vm0, %v2887_v44  ;;  %3127 = vmatmul.mubr.msk.f32.gmra.mrb[2].mxu1 %vm189_vm1, %v2845_v42 }
  0x48   : > { %3239 = vmatmul.mubr.msk.f32.gmra.mrb[2].mxu0 %vm189_vm1, %v2846_v45  ;;  %3129 = vmatprep.mubr.msk.f32.mxu1 %vm189_vm1, %v2846_v45 }
  0x49   : > { %3241 = vmatprep.mubr.msk.f32.mxu0 %vm189_vm1, %v2847_v46 }
  0x4b   : > { %3130 = vmatmul.mubr.msk.f32.gmra.mrb[4].mxu1 %vm189_vm1, %v2847_v46 }
  0x4c   : > { %3242 = vmatmul.mubr.msk.f32.gmra.mrb[4].mxu0 %vm189_vm1, %v2848_v47  ;;  %3132 = vmatprep.mubr.msk.f32.mxu1 %vm189_vm1, %v2848_v47 }
  0x4d   : > { %3244 = vmatprep.mubr.msk.f32.mxu0 %vm189_vm1, %v2849_v48 }
  0x4f   : > { %3133 = vmatmul.mubr.msk.f32.gmra.mrb[6].mxu1 %vm189_vm1, %v2849_v48 }
  0x50   : > { %3245 = vmatmul.mubr.msk.f32.gmra.mrb[6].mxu0 %vm189_vm1, %v2850_v49  ;;  %3137 = vmatprep.mubr.msk.f32.mxu1 %vm189_vm1, %v2717_v50 }
  0x51   : > { %3249 = vmatprep.mubr.msk.f32.mxu0 %vm189_vm1, %v2861_v51 }
  0x53   : > { %3138 = vmatmul.mubr.msk.f32.vlgmr.msra.gmra.mrb[0].mxu1 %vm189_vm1, %v2861_v51 }
  0x54   : > { %3250 = vmatmul.mubr.msk.f32.vlgmr.msra.gmra.mrb[0].mxu0 %vm189_vm1, %v2862_v52  ;;  %3150 = vmatpush3.msk.msra.mxu1 %vm214_vm0, %v2743_v43 }
  0x55   : > { %3262 = vmatpush3.msk.msra.mxu0 %vm214_vm0, %v2887_v44  ;;  %3140 = vmatprep.mubr.msk.f32.mxu1 %vm189_vm1, %v2862_v52 }
  0x56   : > { %3252 = vmatprep.mubr.msk.f32.mxu0 %vm189_vm1, %v2863_v53  ;;  %3163 = vmatprep.subr.msk.mxu1 %vm214_vm0, %v2761_v54 }
  0x57   : > { %3275 = vmatprep.subr.msk.mxu0 %vm214_vm0, %v2905_v55  ;;  %3141 = vmatmul.mubr.msk.f32.gmra.mrb[2].mxu1 %vm189_vm1, %v2863_v53 }
  0x58   : > { %3253 = vmatmul.mubr.msk.f32.gmra.mrb[2].mxu0 %vm189_vm1, %v2864_v56  ;;  %3143 = vmatprep.mubr.msk.f32.mxu1 %vm189_vm1, %v2864_v56 }
  0x59   : > { %3255 = vmatprep.mubr.msk.f32.mxu0 %vm189_vm1, %v2865_v57 }
  0x5b   : > { %3144 = vmatmul.mubr.msk.f32.gmra.mrb[4].mxu1 %vm189_vm1, %v2865_v57 }
  0x5c   : > { %3256 = vmatmul.mubr.msk.f32.gmra.mrb[4].mxu0 %vm189_vm1, %v2866_v58  ;;  %3146 = vmatprep.mubr.msk.f32.mxu1 %vm189_vm1, %v2866_v58 }
  0x5d   : > { %3258 = vmatprep.mubr.msk.f32.mxu0 %vm189_vm1, %v2867_v59 }
  0x5f   : > { %3147 = vmatmul.mubr.msk.f32.gmra.mrb[6].mxu1 %vm189_vm1, %v2867_v59 }
  0x60   : > { %3259 = vmatmul.mubr.msk.f32.gmra.mrb[6].mxu0 %vm189_vm1, %v2868_v60  ;;  %3151 = vmatprep.mubr.msk.f32.mxu1 %vm189_vm1, %v2735_v61 }
  0x61   : > { %3263 = vmatprep.mubr.msk.f32.mxu0 %vm189_vm1, %v2879_v62 }
  0x63   : > { %3152 = vmatmul.mubr.msk.f32.vlgmr.msra.gmra.mrb[0].mxu1 %vm189_vm1, %v2879_v62 }
  0x64   : > { %3264 = vmatmul.mubr.msk.f32.vlgmr.msra.gmra.mrb[0].mxu0 %vm189_vm1, %v2880_v63  ;;  %3164 = vmatpush3.msk.msra.mxu1 %vm214_vm0, %v2761_v54 }
  0x65   : > { %3276 = vmatpush3.msk.msra.mxu0 %vm214_vm0, %v2905_v55  ;;  %3154 = vmatprep.mubr.msk.f32.mxu1 %vm189_vm1, %v2880_v63 }
  0x66   : > { %3266 = vmatprep.mubr.msk.f32.mxu0 %vm189_vm1, %v2881_v0  ;;  %3177 = vmatprep.subr.msk.mxu1 %vm214_vm0, %v2779_v1 }
  0x67   : > { %3289 = vmatprep.subr.msk.mxu0 %vm214_vm0, %v2923_v2  ;;  %3155 = vmatmul.mubr.msk.f32.gmra.mrb[2].mxu1 %vm189_vm1, %v2881_v0 }
  0x68   : > { %3267 = vmatmul.mubr.msk.f32.gmra.mrb[2].mxu0 %vm189_vm1, %v2882_v3  ;;  %3157 = vmatprep.mubr.msk.f32.mxu1 %vm189_vm1, %v2882_v3 }
  0x69   : > { %3269 = vmatprep.mubr.msk.f32.mxu0 %vm189_vm1, %v2883_v4 }
  0x6b   : > { %3158 = vmatmul.mubr.msk.f32.gmra.mrb[4].mxu1 %vm189_vm1, %v2883_v4 }
  0x6c   : > { %3270 = vmatmul.mubr.msk.f32.gmra.mrb[4].mxu0 %vm189_vm1, %v2884_v5  ;;  %3160 = vmatprep.mubr.msk.f32.mxu1 %vm189_vm1, %v2884_v5 }
  0x6d   : > { %3272 = vmatprep.mubr.msk.f32.mxu0 %vm189_vm1, %v2885_v6 }
  0x6f   : > { %3161 = vmatmul.mubr.msk.f32.gmra.mrb[6].mxu1 %vm189_vm1, %v2885_v6 }
  0x70   : > { %3273 = vmatmul.mubr.msk.f32.gmra.mrb[6].mxu0 %vm189_vm1, %v2886_v7  ;;  %3165 = vmatprep.mubr.msk.f32.mxu1 %vm189_vm1, %v2753_v8 }
  0x71   : > { %3277 = vmatprep.mubr.msk.f32.mxu0 %vm189_vm1, %v2897_v9 }
  0x73   : > { %3166 = vmatmul.mubr.msk.f32.vlgmr.msra.gmra.mrb[0].mxu1 %vm189_vm1, %v2897_v9 }
  0x74   : > { %3278 = vmatmul.mubr.msk.f32.vlgmr.msra.gmra.mrb[0].mxu0 %vm189_vm1, %v2898_v10  ;;  %3178 = vmatpush3.msk.msra.mxu1 %vm214_vm0, %v2779_v1 }
  0x75   : > { %3290 = vmatpush3.msk.msra.mxu0 %vm214_vm0, %v2923_v2  ;;  %3168 = vmatprep.mubr.msk.f32.mxu1 %vm189_vm1, %v2898_v10 }
  0x76   : > { %3280 = vmatprep.mubr.msk.f32.mxu0 %vm189_vm1, %v2899_v11 }
  0x77   : > { %3169 = vmatmul.mubr.msk.f32.gmra.mrb[2].mxu1 %vm189_vm1, %v2899_v11 }
  0x78   : > { %3281 = vmatmul.mubr.msk.f32.gmra.mrb[2].mxu0 %vm189_vm1, %v2900_v12  ;;  %3171 = vmatprep.mubr.msk.f32.mxu1 %vm189_vm1, %v2900_v12 }
  0x79   : > { %3283 = vmatprep.mubr.msk.f32.mxu0 %vm189_vm1, %v2901_v13 }
  0x7b   : > { %3172 = vmatmul.mubr.msk.f32.gmra.mrb[4].mxu1 %vm189_vm1, %v2901_v13 }
  0x7c   : > { %3284 = vmatmul.mubr.msk.f32.gmra.mrb[4].mxu0 %vm189_vm1, %v2902_v14  ;;  %3174 = vmatprep.mubr.msk.f32.mxu1 %vm189_vm1, %v2902_v14 }
  0x7d   : > { %3286 = vmatprep.mubr.msk.f32.mxu0 %vm189_vm1, %v2903_v15 }
  0x7f   : > { %3175 = vmatmul.mubr.msk.f32.gmra.mrb[6].mxu1 %vm189_vm1, %v2903_v15 }
  0x80   : > { %3287 = vmatmul.mubr.msk.f32.gmra.mrb[6].mxu0 %vm189_vm1, %v2904_v16  ;;  %3179 = vmatprep.mubr.msk.f32.mxu1 %vm189_vm1, %v2771_v17 }
  0x81   : > { %3291 = vmatprep.mubr.msk.f32.mxu0 %vm189_vm1, %v2915_v18 }
  0x83   : > { %3180 = vmatmul.mubr.msk.f32.vlgmr.msra.gmra.mrb[0].mxu1 %vm189_vm1, %v2915_v18 }
  0x84   : > { %3292 = vmatmul.mubr.msk.f32.vlgmr.msra.gmra.mrb[0].mxu0 %vm189_vm1, %v2916_v19  ;;  %3182 = vmatprep.mubr.msk.f32.mxu1 %vm189_vm1, %v2916_v19 }
  0x85   : > { %3294 = vmatprep.mubr.msk.f32.mxu0 %vm189_vm1, %v2917_v20 }
  0x87   : > { %3183 = vmatmul.mubr.msk.f32.gmra.mrb[2].mxu1 %vm189_vm1, %v2917_v20 }
  0x88   : > { %3295 = vmatmul.mubr.msk.f32.gmra.mrb[2].mxu0 %vm189_vm1, %v2918_v21  ;;  %3185 = vmatprep.mubr.msk.f32.mxu1 %vm189_vm1, %v2918_v21 }
  0x89   : > { %3297 = vmatprep.mubr.msk.f32.mxu0 %vm189_vm1, %v2919_v22  ;;  %v2597_v50 = vpop.permute.xlu0 %2596 }
  0x8b   : > { %3186 = vmatmul.mubr.msk.f32.gmra.mrb[4].mxu1 %vm189_vm1, %v2919_v22 }
  0x8c   : > { %3298 = vmatmul.mubr.msk.f32.gmra.mrb[4].mxu0 %vm189_vm1, %v2920_v23  ;;  %3188 = vmatprep.mubr.msk.f32.mxu1 %vm189_vm1, %v2920_v23 }
  0x8d   : > { %3300 = vmatprep.mubr.msk.f32.mxu0 %vm189_vm1, %v2921_v24 }
  0x8f   : > { %3189 = vmatmul.mubr.msk.f32.gmra.mrb[6].mxu1 %vm189_vm1, %v2921_v24 }
  0x90   : > { %3301 = vmatmul.mubr.msk.f32.gmra.mrb[6].mxu0 %vm189_vm1, %v2922_v25 }
 0x156   : > { %v3181_v26 = vpop.f32.mrb[0].mxu1 }
 0x157   : > { %v3293_v27 = vpop.f32.mrb[0].mxu0  ;;  %v1310_v29 = vpop.f32.mrb[1].mxu1 }
 0x158   : > { %v3303_v28 = vadd.f32 %v3293_v27, %v3181_v26  ;;  %v2514_v30 = vpop.f32.mrb[1].mxu0 }
 0x159   : > { %v3304_v31 = vadd.f32 %v2514_v30, %v1310_v29 }
 0x15a   : > { %v3184_v33 = vpop.f32.mrb[2].mxu1 }
 0x15b   : > { %v3296_v32 = vpop.f32.mrb[2].mxu0  ;;  %2561 = vxpose.xlu0.b32.start [1/8] (short) (narrow) %v3304_v31, 8  ;;  %v1320_v35 = vpop.f32.mrb[3].mxu1 }
 0x15c   : > { %v3305_v34 = vadd.f32 %v3296_v32, %v3184_v33  ;;  %v2524_v36 = vpop.f32.mrb[3].mxu0 }
 0x15d   : > { %v3306_v37 = vadd.f32 %v2524_v36, %v1320_v35 }
 0x15e   : > { %v3187_v39 = vpop.f32.mrb[4].mxu1 }
 0x15f   : > { %v3299_v38 = vpop.f32.mrb[4].mxu0  ;;  %2562 = vxpose.xlu0.b32.cont [2/8] (short) (narrow) %v3303_v28, 8  ;;  %v1330_v41 = vpop.f32.mrb[5].mxu1 }
 0x160   : > { %v3307_v40 = vadd.f32 %v3299_v38, %v3187_v39  ;;  %v2534_v42 = vpop.f32.mrb[5].mxu0 }
 0x161   : > { %v3308_v43 = vadd.f32 %v2534_v42, %v1330_v41 }
 0x162   : > { %v3190_v45 = vpop.f32.mrb[6].mxu1 }
 0x163   : > { %v3302_v44 = vpop.f32.mrb[6].mxu0  ;;  %2563 = vxpose.xlu0.b32.cont [3/8] (short) (narrow) %v3306_v37, 8  ;;  %v1340_v47 = vpop.f32.mrb[7].mxu1 }
 0x164   : > { %v3309_v46 = vadd.f32 %v3302_v44, %v3190_v45  ;;  %v2544_v48 = vpop.f32.mrb[7].mxu0 }
 0x165   : > { %v3310_v49 = vadd.f32 %v2544_v48, %v1340_v47 }
 0x167   : > { %2564 = vxpose.xlu0.b32.cont [4/8] (short) (narrow) %v3305_v34, 8 }
 0x16b   : > { %2565 = vxpose.xlu0.b32.cont [5/8] (short) (narrow) %v3308_v43, 8 }
 0x16f   : > { %2566 = vxpose.xlu0.b32.cont [6/8] (short) (narrow) %v3307_v40, 8 }
 0x173   : > { %2567 = vxpose.xlu0.b32.cont [7/8] (short) (narrow) %v3310_v49, 8 }
 0x177   : > { %2568 = vxpose.xlu0.b32.end [8/8] (short) (narrow) %v3309_v46, 8 }
 0x1db   : > { %v2577_v51 = vpop.trf.xlu0 }
 0x1dc   : > { %v2599_v52 = vadd.f32 %v2597_v50, %v2577_v51 }
 0x1de   : > { %2601 = vst.msk [vmem:[%s168_s30] sm:$0xff] %vm2600_vm2, %v2599_v52 }
 0x1df PF: > { %s13_s12 = sadd.s32 1, %s3441_s12  }
 0x1e0   : > { %p10_p4 = scmp.ge.s32.totalorder %s13_s12, 8  }
 0x1e2   :  { %12 = sbr.rel (!%p10_p4) target bundleno = 1 (0x1), region = 84 }

</bundles_post_ra>
